<compile_context>
chip_gen: v5e
topology: v5e:2x2
jax: 0.10.0
libtpu: 0.0.40
codegen_flags: <defaults>
</compile_context>

<pallas_src>
import jax
import jax.numpy as jnp
from jax.experimental import pallas as pl
from jax.experimental.pallas import tpu as pltpu


# ----------------------------------------------------------------------------
# Fused 1x1 conv + BN(affine) + SiLU kernel, NCHW / lane-dense spatial layout
# ----------------------------------------------------------------------------
def _focus_conv_kernel(x_ref, w_ref, scale_ref, shift_ref, o_ref):
    # x_ref:     (1, K, TS)    K = 4*C1, TS = spatial tile (lanes)
    # w_ref:     (C2, K)
    # scale_ref: (C2, 1)       shift_ref: (C2, 1)
    # o_ref:     (1, C2, TS)
    x = x_ref[0].astype(jnp.float32)                            # (K, TS)
    w = w_ref[...].astype(jnp.float32)                          # (C2, K)
    z = jnp.dot(w, x, preferred_element_type=jnp.float32)       # (C2, TS)
    z = z * scale_ref[...] + shift_ref[...]                     # folded BN
    o_ref[0] = (z * jax.nn.sigmoid(z)).astype(o_ref.dtype)      # SiLU


def _pick_spatial_tile(s, cap=4096):
    """Full extent if small; otherwise a multiple-of-128 tile (<= cap)."""
    if s <= cap:
        return s
    return cap  # cap is a multiple of 128


def focus_conv_bn_silu(xc, w, scale, shift):
    """xc: (N, 4*C1, S) space-to-depth input (NCHW flattened). Returns (N, C2, S)."""
    N, K, S = xc.shape
    C2 = w.shape[0]
    ts = _pick_spatial_tile(S)
    s_tiles = pl.cdiv(S, ts)

    itemsize = jnp.dtype(xc.dtype).itemsize
    # double-buffered input + output tiles, plus weights/BN and headroom
    tile_bytes = (K + C2) * ts * itemsize
    vmem_limit = int(min(max(4 * tile_bytes + (1 << 20), 8 << 20), 32 << 20))

    cost = pl.CostEstimate(
        flops=2 * N * S * K * C2,
        transcendentals=N * S * C2,                               # sigmoid
        bytes_accessed=(xc.size + w.size + scale.size + shift.size
                        + N * C2 * S) * itemsize,
    )

    return pl.pallas_call(
        _focus_conv_kernel,
        out_shape=jax.ShapeDtypeStruct((N, C2, S), xc.dtype),
        grid=(N, s_tiles),
        in_specs=[
            pl.BlockSpec((1, K, ts), lambda n, i: (n, 0, i)),
            pl.BlockSpec((C2, K), lambda n, i: (0, 0)),
            pl.BlockSpec((C2, 1), lambda n, i: (0, 0)),
            pl.BlockSpec((C2, 1), lambda n, i: (0, 0)),
        ],
        out_specs=pl.BlockSpec((1, C2, ts), lambda n, i: (n, 0, i)),
        compiler_params=pltpu.CompilerParams(
            dimension_semantics=("parallel", "parallel"),
            vmem_limit_bytes=vmem_limit,
        ),
        cost_estimate=cost,
    )(xc, w, scale.reshape(C2, 1), shift.reshape(C2, 1))


# ----------------------------------------------------------------------------
# Focus wrapper (NCHW in / NCHW out, like PyTorch)
# ----------------------------------------------------------------------------
def focus_forward(x_nchw, params):
    N, C1, H, W = x_nchw.shape
    assert H % 2 == 0 and W % 2 == 0, "Focus requires even spatial dims"
    Ho, Wo = H // 2, W // 2
    # Space-to-depth == torch.cat of the 4 stride-2 slices along channels.
    # TODO(synk): the stride-2 pixel gather has no clean BlockSpec/index_map
    # equivalent; it is done once here as a single fused XLA reshape+transpose
    # (the same data movement the torch.cat of 4 strided slices performs).
    xc = x_nchw.reshape(N, C1, Ho, 2, Wo, 2)
    xc = jnp.transpose(xc, (0, 5, 3, 1, 2, 4))      # (N, cp, rp, C1, Ho, Wo)
    xc = xc.reshape(N, 4 * C1, Ho * Wo)             # channel order matches the cat
    out = focus_conv_bn_silu(xc, params["w"], params["scale"], params["shift"])
    return out.reshape(N, -1, Ho, Wo)               # already NCHW, no transpose


def make_params(key, c1, c2, eps=1e-5):
    k = 4 * c1
    ks = jax.random.split(key, 5)
    # Conv2d(4*c1, c2, 1, bias=False) weight, flattened to (C2, 4*C1)
    w = jax.random.normal(ks[0], (c2, k), jnp.float32) * 0.1
    # BatchNorm2d(c2) eval-mode params, folded into scale/shift
    g = 0.5 + jax.random.uniform(ks[1], (c2,), jnp.float32)
    b = jax.random.normal(ks[2], (c2,), jnp.float32) * 0.1
    m = jax.random.normal(ks[3], (c2,), jnp.float32) * 0.1
    v = 0.5 + jax.random.uniform(ks[4], (c2,), jnp.float32)
    s = g / jnp.sqrt(v + eps)
    return {"w": w, "scale": s, "shift": b - m * s}


# ----------------------------------------------------------------------------
# Pure-JAX reference (independent of the kernel's rearrangement trick)
# ----------------------------------------------------------------------------
def focus_reference(x, params):
    xs = jnp.concatenate(
        [x[:, :, ::2, ::2], x[:, :, 1::2, ::2],
         x[:, :, ::2, 1::2], x[:, :, 1::2, 1::2]], axis=1)
    z = jnp.einsum("nkhw,ok->nohw", xs, params["w"])
    z = z * params["scale"][None, :, None, None] + params["shift"][None, :, None, None]
    return z * jax.nn.sigmoid(z)


if __name__ == "__main__":
    # Shapes consistent with Focus(c1=4, c2=8), k=1, s=1 (defaults)
    N, C1, H, W = 2, 4, 16, 16
    C2 = 8

    key = jax.random.PRNGKey(0)
    kx, kp = jax.random.split(key)
    x = jax.random.normal(kx, (N, C1, H, W), jnp.float32)  # PyTorch NCHW input
    params = make_params(kp, C1, C2)

    fwd = jax.jit(focus_forward)
    out = jax.block_until_ready(fwd(x, params))
    assert out.shape == (N, C2, H // 2, W // 2), out.shape

    ref = jax.block_until_ready(focus_reference(x, params))
    err = float(jnp.max(jnp.abs(out - ref)))
    assert jnp.allclose(out, ref, atol=1e-4, rtol=1e-4), err

    print("KERNEL_OK")
</pallas_src>

<mosaic_0001>
module attributes {stable_mosaic.version = 11 : i64} {
  func.func @_focus_conv_kernel(%arg0: i32, %arg1: i32, %arg2: memref<1x16x64xf32, #tpu.memory_space<vmem>>, %arg3: memref<8x16xf32, #tpu.memory_space<vmem>>, %arg4: memref<8x1xf32, #tpu.memory_space<vmem>>, %arg5: memref<8x1xf32, #tpu.memory_space<vmem>>, %arg6: memref<1x8x64xf32, #tpu.memory_space<vmem>>) attributes {dimension_semantics = [#tpu.dimension_semantics<parallel>, #tpu.dimension_semantics<parallel>], iteration_bounds = array<i64: 2, 1>, scalar_prefetch = 0 : i64, scratch_operands = 0 : i64, tpu.core_type = #tpu.core_type<tc>, window_params = [{transform_indices = @transform_0, window_bounds = array<i64: 1, 16, 64>}, {pipeline_mode = #tpu.pipeline_mode<synchronous>, transform_indices = @transform_1, window_bounds = array<i64: 8, 16>}, {pipeline_mode = #tpu.pipeline_mode<synchronous>, transform_indices = @transform_2, window_bounds = array<i64: 8, 1>}, {pipeline_mode = #tpu.pipeline_mode<synchronous>, transform_indices = @transform_3, window_bounds = array<i64: 8, 1>}, {transform_indices = @transform_4, window_bounds = array<i64: 1, 8, 64>}]} {
    %c0 = arith.constant 0 : index
    %c0_0 = arith.constant 0 : index
    %c0_1 = arith.constant 0 : index
    %0 = vector.load %arg2[%c0, %c0_0, %c0_1] : memref<1x16x64xf32, #tpu.memory_space<vmem>>, vector<1x16x64xf32>
    %1 = vector.shape_cast %0 : vector<1x16x64xf32> to vector<16x64xf32>
    %c0_2 = arith.constant 0 : index
    %c0_3 = arith.constant 0 : index
    %2 = vector.load %arg3[%c0_2, %c0_3] : memref<8x16xf32, #tpu.memory_space<vmem>>, vector<8x16xf32>
    %cst = arith.constant dense<0.000000e+00> : vector<8x64xf32>
    %3 = tpu.matmul %2, %1, %cst {dimension_numbers = #tpu.dot_dimension_numbers<[1], [0], [0], [1], [0, 0, 1, 1], [], []>} : vector<8x16xf32>, vector<16x64xf32>, vector<8x64xf32> -> vector<8x64xf32>
    %c0_4 = arith.constant 0 : index
    %c0_5 = arith.constant 0 : index
    %4 = vector.load %arg4[%c0_4, %c0_5] : memref<8x1xf32, #tpu.memory_space<vmem>>, vector<8x1xf32>
    %5 = vector.broadcast %4 : vector<8x1xf32> to vector<8x64xf32>
    %6 = arith.mulf %3, %5 : vector<8x64xf32>
    %c0_6 = arith.constant 0 : index
    %c0_7 = arith.constant 0 : index
    %7 = vector.load %arg5[%c0_6, %c0_7] : memref<8x1xf32, #tpu.memory_space<vmem>>, vector<8x1xf32>
    %8 = vector.broadcast %7 : vector<8x1xf32> to vector<8x64xf32>
    %9 = arith.addf %6, %8 : vector<8x64xf32>
    %10 = arith.negf %9 : vector<8x64xf32>
    %11 = math.exp %10 : vector<8x64xf32>
    %cst_8 = arith.constant 1.000000e+00 : f32
    %12 = vector.broadcast %cst_8 : f32 to vector<8x64xf32>
    %13 = arith.addf %12, %11 : vector<8x64xf32>
    %14 = arith.divf %12, %13 : vector<8x64xf32>
    %15 = arith.mulf %9, %14 : vector<8x64xf32>
    %c0_9 = arith.constant 0 : index
    %c0_10 = arith.constant 0 : index
    %c0_11 = arith.constant 0 : index
    %16 = vector.load %arg6[%c0_9, %c0_10, %c0_11] : memref<1x8x64xf32, #tpu.memory_space<vmem>>, vector<1x8x64xf32>
    %17 = vector.shape_cast %16 : vector<1x8x64xf32> to vector<8x64xf32>
    %18 = vector.shape_cast %15 : vector<8x64xf32> to vector<1x8x64xf32>
    tpu.vector_store %arg6[%c0_9, %c0_10, %c0_11], %18 {strides = array<i32>} : memref<1x8x64xf32, #tpu.memory_space<vmem>>, vector<1x8x64xf32>,
    return
  }
  func.func @transform_0(%arg0: i32, %arg1: i32) -> (i32, i32, i32) {
    %c0_i32 = arith.constant 0 : i32
    %c0_i32_0 = arith.constant 0 : i32
    return %arg0, %c0_i32, %arg1 : i32, i32, i32
  }
  func.func @transform_1(%arg0: i32, %arg1: i32) -> (i32, i32) {
    %c0_i32 = arith.constant 0 : i32
    %c0_i32_0 = arith.constant 0 : i32
    %c0_i32_1 = arith.constant 0 : i32
    return %c0_i32, %c0_i32_0 : i32, i32
  }
  func.func @transform_2(%arg0: i32, %arg1: i32) -> (i32, i32) {
    %c0_i32 = arith.constant 0 : i32
    %c0_i32_0 = arith.constant 0 : i32
    %c0_i32_1 = arith.constant 0 : i32
    return %c0_i32, %c0_i32_0 : i32, i32
  }
  func.func @transform_3(%arg0: i32, %arg1: i32) -> (i32, i32) {
    %c0_i32 = arith.constant 0 : i32
    %c0_i32_0 = arith.constant 0 : i32
    %c0_i32_1 = arith.constant 0 : i32
    return %c0_i32, %c0_i32_0 : i32, i32
  }
  func.func @transform_4(%arg0: i32, %arg1: i32) -> (i32, i32, i32) {
    %c0_i32 = arith.constant 0 : i32
    %c0_i32_0 = arith.constant 0 : i32
    return %arg0, %c0_i32, %arg1 : i32, i32, i32
  }
}

</mosaic_0001>

<bundles_post_ra>
// kernel: focus_forward.1
= control target key start
LH: loop header
LB: loop body
LE: loop exit
PB: predicated region body
PF: predicated region fallthrough
CT: control target
= control target key end

     0   :  { %s460_s15 = smov 0   ;;  %s462_s16 = smov 0   ;;  %s506_s0 = inlined_call_operand.vmem [shape: f32[2,16,64], index: 0, kind: input, shape index: {}]   ;;  %s507_s1 = inlined_call_operand.vmem [shape: f32[8,16], index: 1, kind: input, shape index: {}]   ;;  %s508_s2 = inlined_call_operand.vmem [shape: f32[8,1], index: 2, kind: input, shape index: {}]   ;;  %s509_s3 = inlined_call_operand.vmem [shape: f32[8,1], index: 3, kind: input, shape index: {}]   ;;  %s510_s4 = inlined_call_operand.vmem [shape: f32[2,8,64], index: 4, kind: output, shape index: {}]  }
   0x1   :  { %s464_s17 = smov 0  }
   0x2 LB: > { %s26_s18 = sadd.s32 1, %s428_s16  ;;  %p371_p0 = scmp.ge.s32.totalorder %s432_s17, 1  ;;  %s432_s17 = sphi %s464_s17, %s14_s17   ;;  %s428_s16 = sphi %s462_s16, %s512_s16   ;;  %s424_s15 = sphi %s460_s15, %s511_s15  }
   0x3   : > { %p28_p1 = scmp.ge.s32.totalorder %s26_s18, 2  ;;  %p181_p2 = scmp.lt.s32.totalorder %s432_s17, 3 }
   0x5   : > { %s514_s18 = smov (%p28_p1, %s26_s18), 0  ;;  %p182_p3 = pnand %p371_p0, %p181_p2 }
   0x6   : > { %p212_p4 = scmp.lt.s32.totalorder (!%p182_p3), %s424_s15, 1 }
   0x7   : > { %185 = sbr.rel (%p182_p3) target bundleno = 180 (0xb4), region = 36 }
   0xc   : > { %v254_v0 = vld [vmem:[%s508_s2] sm:$0xff]  ;;  %v434_v1 = vmov 0   ;;  %s516_s15 = smov (!%p212_p4, %s424_s15), 1  ;;  %vm230_vm0 = vcmask 130048   ;;  %vm288_vm5 = vcmask 523264  }
   0xd   : > { %405 = vset.pattern.permute.xlu0 %v434_v1  ;;  %s379_s21 = sshll.u32 %s516_s15, 4  ;;  %v229_v4 = vld [vmem:[%s507_s1] sm:$0xff]  ;;  %s374_s29 = sshll.u32 %s516_s15, 3 }
   0xe   : > { %257 = vperm.xlu0 %405, %v254_v0   ;;  %s219_s24 = scalar_lea.vmem %s506_s0, %s379_s21  ;;  %v261_v5 = vld [vmem:[%s509_s3] sm:$0xff]  ;;  %s226_s6 = scalar_lea.vmem %s510_s4, %s374_s29 }
   0xf   : > { %v228_v2 = vld [vmem:[%s219_s24 + $0x8] sm:$0xff]  ;;  %v227_v3 = vld [vmem:[%s219_s24] sm:$0xff] }
  0x10   : > { %248 = vmatpush.msra.mxu0 %v228_v2 }
  0x12   : > { %249 = vmatpush.msra.mxu0 %v227_v3 }
  0x13   : > { %375 = vmatmul.msk.f32.vlgmr.msra.gmra.mxu0 %vm230_vm0, %v229_v4 }
  0x16   : > { %264 = vperm.xlu0 %405, %v261_v5  }
  0x80   : > { %v258_v6 = vpop.permute.xlu0 %257 }
  0x88   : > { %v265_v9 = vpop.permute.xlu0 %264 }
  0x90   : > { %v251_v7 = vpop.f32.mrf.mxu0 }
  0x91   : > { %v260_v8 = vmul.f32 %v258_v6, %v251_v7 }
  0x93   : > { %v267_v10 = vadd.f32 %v265_v9, %v260_v8 }
  0x95   : > { %v376_v11 = vmul.f32 -1.442695, %v267_v10 }
  0x97   : > { %406 = vpow2.f32 %v376_v11 }
  0x9d   : > { %v407_v12 = vpop.eup %406 }
  0x9e   : > { %v271_v13 = vadd.f32 1.0, %v407_v12 }
  0xa0   : > { %408 = vrcp.f32 %v271_v13  ;;  %v283_v17 = vand.u32 2147483648, %v271_v13  ;;  %v281_v19 = vand.u32 2147483647, %v271_v13  ;;  %vm277_vm2 = vweird.f32 %v271_v13 }
  0xa2   : > { %v284_v21 = vor.u32 1.1754944e-38, %v283_v17  ;;  %vm282_vm4 = vcmp.eq.f32.partialorder %v281_v19, 8.507059e+37 }
  0xa6   : > { %v409_v14 = vpop.eup %408 }
  0xa7   : > { %v273_v15 = vmul.f32 %v409_v14, %v271_v13  ;;  %vm278_vm1 = vweird.f32 %v409_v14 }
  0xa8   : > { %vm279_vm3 = vmor %vm277_vm2, %vm278_vm1 }
  0xa9   : > { %v274_v16 = vsub.f32 1.0, %v273_v15 }
  0xab   : > { %v275_v18 = vmul.f32 %v409_v14, %v274_v16 }
  0xad   : > { %v276_v20 = vadd.f32 %v409_v14, %v275_v18 }
  0xaf   : > { %v280_v22 = vsel %vm279_vm3, %v409_v14, %v276_v20 }
  0xb0   : > { %v285_v23 = vsel %vm282_vm4, %v284_v21, %v280_v22 }
  0xb1   : > { %v287_v24 = vmul.f32 %v285_v23, %v267_v10 }
  0xb3   : > { %289 = vst.msk [vmem:[%s226_s6] sm:$0xff] %vm288_vm5, %v287_v24 }
  0xb4 PF: > { %s14_s17 = sadd.s32 1, %s432_s17   ;;  %s511_s15 = smov %s428_s16 }
  0xb5   : > { %p11_p5 = scmp.ge.s32.totalorder %s14_s17, 4   ;;  %s512_s16 = smov %s514_s18 }
  0xb7   :  { %13 = sbr.rel (!%p11_p5) target bundleno = 2 (0x2), region = 66 }

</bundles_post_ra>
